<compile_context>
chip_gen: v6e
topology: v6e:2x2x1
jax: 0.10.0
libtpu: 0.0.40
codegen_flags: <defaults>
</compile_context>

<pallas_src>
import jax
import jax.numpy as jnp
from jax.experimental import pallas as pl
from jax.experimental.pallas import tpu as pltpu


def _make_pos_embed_kernel(H, W, F):
    """Builds the kernel as a closure over the static spatial shape."""
    HW = H * W
    inv_w = 1.0 / W

    def kernel(col_ref, row_ref, out_ref):
        # col_ref / row_ref : (50, F) embedding tables, whole-array in VMEM
        # out_ref           : (2F, H*W) flattened-NCHW, batch-invariant map
        col_w = col_ref[:W, :]                       # (W, F) static slice
        row_w = row_ref[:H, :]                       # (H, F) static slice

        # Lane index k = h*W + w. Recover h and w with an exact float
        # floor-divide (avoids vector integer div/mod); exact for k < 2500.
        k_f = jax.lax.broadcasted_iota(jnp.int32, (W, HW), 1).astype(jnp.float32)
        h_of_k = jnp.floor((k_f + 0.5) * inv_w)      # == floor(k / W)
        w_of_k = k_f - h_of_k * W                    # == k mod W
        w_src = jax.lax.broadcasted_iota(jnp.int32, (W, HW), 0).astype(jnp.float32)
        sel_col = (w_of_k == w_src).astype(jnp.float32)          # (W, HW) one-hot

        k_i = jax.lax.broadcasted_iota(jnp.int32, (H, HW), 1)
        h_lo = jax.lax.broadcasted_iota(jnp.int32, (H, HW), 0) * W
        sel_row = ((k_i >= h_lo) & (k_i < h_lo + W)).astype(jnp.float32)  # (H, HW)

        # One MXU pass per half; the table transpose is fused into the
        # contraction (contract over dim 0 of the (W|H, F) table).
        col_half = jax.lax.dot_general(
            col_w, sel_col, (((0,), (0,)), ((), ())),
            preferred_element_type=jnp.float32)                  # (F, HW)
        row_half = jax.lax.dot_general(
            row_w, sel_row, (((0,), (0,)), ((), ())),
            preferred_element_type=jnp.float32)                  # (F, HW)

        # Two sublane-aligned stores; at the demo shape (F % 8 == 0,
        # HW % 128 == 0) these are full-width unmasked vst.
        out_ref[:F, :] = col_half
        out_ref[F:, :] = row_half

    return kernel


def position_embedding_learned(x, row_weight, col_weight):
    """x: (B, C, H, W). row_weight/col_weight: (50, F). Returns (B, 2F, H, W) f32."""
    B = x.shape[0]
    H, W = int(x.shape[-2]), int(x.shape[-1])
    F = row_weight.shape[1]

    # Loud (trace-time) failure instead of a silent short slice.
    assert H <= row_weight.shape[0], f"H={H} exceeds row embedding table size"
    assert W <= col_weight.shape[0], f"W={W} exceeds col embedding table size"

    col_tab = col_weight.astype(jnp.float32)   # no-op if already f32
    row_tab = row_weight.astype(jnp.float32)

    vmem = pltpu.MemorySpace.VMEM
    pos_flat = pl.pallas_call(
        _make_pos_embed_kernel(H, W, F),
        out_shape=jax.ShapeDtypeStruct((2 * F, H * W), jnp.float32),
        in_specs=[pl.BlockSpec(memory_space=vmem),
                  pl.BlockSpec(memory_space=vmem)],
        out_specs=pl.BlockSpec(memory_space=vmem),
    )(col_tab, row_tab)

    # Layout-preserving reshape + lazy batch broadcast (matches the PyTorch
    # .unsqueeze(0).repeat(B, 1, 1, 1)); fuses into the consumer under jit.
    pos = pos_flat.reshape(2 * F, H, W)
    return jnp.broadcast_to(pos[None], (B, 2 * F, H, W))


def _reference(x, row_weight, col_weight):
    """Pure-JAX reference mirroring the PyTorch forward."""
    B = x.shape[0]
    H, W = x.shape[-2], x.shape[-1]
    x_emb = col_weight[:W, :]                                   # (W, F)
    y_emb = row_weight[:H, :]                                   # (H, F)
    col_b = jnp.broadcast_to(x_emb[None, :, :], (H, W, x_emb.shape[1]))
    row_b = jnp.broadcast_to(y_emb[:, None, :], (H, W, y_emb.shape[1]))
    pos = jnp.concatenate([col_b, row_b], axis=-1)              # (H, W, 2F)
    pos = jnp.transpose(pos, (2, 0, 1))[None]                   # (1, 2F, H, W)
    return jnp.broadcast_to(pos, (B,) + pos.shape[1:])


if __name__ == "__main__":
    num_pos_feats = 32
    B, C, H, W = 2, 4, 16, 16

    key = jax.random.PRNGKey(0)
    k_x, k_row, k_col = jax.random.split(key, 3)

    # Dummy input tensor (only its shape matters, as in the PyTorch forward).
    x = jax.random.normal(k_x, (B, C, H, W), dtype=jnp.float32)

    # nn.init.uniform_ -> U[0, 1) on the (50, num_pos_feats) embedding tables.
    row_weight = jax.random.uniform(k_row, (50, num_pos_feats), dtype=jnp.float32)
    col_weight = jax.random.uniform(k_col, (50, num_pos_feats), dtype=jnp.float32)

    fn = jax.jit(position_embedding_learned)
    out = jax.block_until_ready(fn(x, row_weight, col_weight))

    ref = _reference(x, row_weight, col_weight)
    assert out.shape == (B, 2 * num_pos_feats, H, W), out.shape
    assert out.dtype == jnp.float32
    assert jnp.allclose(out, ref), "mismatch vs reference"

    print("KERNEL_OK")
</pallas_src>

<mosaic_0001>
module attributes {stable_mosaic.version = 11 : i64} {
  func.func @kernel(%arg0: memref<50x32xf32, #tpu.memory_space<vmem>>, %arg1: memref<50x32xf32, #tpu.memory_space<vmem>>, %arg2: memref<64x256xf32, #tpu.memory_space<vmem>>) attributes {dimension_semantics = [], scalar_prefetch = 0 : i64, scratch_operands = 0 : i64, tpu.core_type = #tpu.core_type<tc>} {
    %c0 = arith.constant 0 : index
    %c0_0 = arith.constant 0 : index
    %0 = vector.load %arg0[%c0, %c0_0] : memref<50x32xf32, #tpu.memory_space<vmem>>, vector<16x32xf32>
    %c0_1 = arith.constant 0 : index
    %c0_2 = arith.constant 0 : index
    %1 = vector.load %arg1[%c0_1, %c0_2] : memref<50x32xf32, #tpu.memory_space<vmem>>, vector<16x32xf32>
    %2 = tpu.iota {dimensions = array<i32: 1>} : vector<16x256xi32>
    %3 = arith.sitofp %2 : vector<16x256xi32> to vector<16x256xf32>
    %cst = arith.constant 5.000000e-01 : f32
    %4 = vector.broadcast %cst : f32 to vector<16x256xf32>
    %5 = arith.addf %3, %4 : vector<16x256xf32>
    %cst_3 = arith.constant 6.250000e-02 : f32
    %6 = vector.broadcast %cst_3 : f32 to vector<16x256xf32>
    %7 = arith.mulf %5, %6 : vector<16x256xf32>
    %8 = math.floor %7 : vector<16x256xf32>
    %cst_4 = arith.constant 1.600000e+01 : f32
    %9 = vector.broadcast %cst_4 : f32 to vector<16x256xf32>
    %10 = arith.mulf %8, %9 : vector<16x256xf32>
    %11 = arith.subf %3, %10 : vector<16x256xf32>
    %12 = tpu.iota {dimensions = array<i32: 0>} : vector<16x256xi32>
    %13 = arith.sitofp %12 : vector<16x256xi32> to vector<16x256xf32>
    %14 = arith.cmpf oeq, %11, %13 : vector<16x256xf32>
    %15 = arith.extui %14 : vector<16x256xi1> to vector<16x256xi32>
    %16 = arith.sitofp %15 : vector<16x256xi32> to vector<16x256xf32>
    %17 = tpu.iota {dimensions = array<i32: 1>} : vector<16x256xi32>
    %18 = tpu.iota {dimensions = array<i32: 0>} : vector<16x256xi32>
    %c16_i32 = arith.constant 16 : i32
    %19 = vector.broadcast %c16_i32 : i32 to vector<16x256xi32>
    %20 = arith.muli %18, %19 : vector<16x256xi32>
    %21 = arith.cmpi sge, %17, %20 : vector<16x256xi32>
    %c16_i32_5 = arith.constant 16 : i32
    %22 = vector.broadcast %c16_i32_5 : i32 to vector<16x256xi32>
    %23 = arith.addi %20, %22 : vector<16x256xi32>
    %24 = arith.cmpi slt, %17, %23 : vector<16x256xi32>
    %25 = arith.andi %21, %24 : vector<16x256xi1>
    %26 = arith.extui %25 : vector<16x256xi1> to vector<16x256xi32>
    %27 = arith.sitofp %26 : vector<16x256xi32> to vector<16x256xf32>
    %cst_6 = arith.constant dense<0.000000e+00> : vector<32x256xf32>
    %28 = tpu.matmul %0, %16, %cst_6 {dimension_numbers = #tpu.dot_dimension_numbers<[0], [0], [1], [1], [0, 1, 1, 1], [], []>} : vector<16x32xf32>, vector<16x256xf32>, vector<32x256xf32> -> vector<32x256xf32>
    %cst_7 = arith.constant dense<0.000000e+00> : vector<32x256xf32>
    %29 = tpu.matmul %1, %27, %cst_7 {dimension_numbers = #tpu.dot_dimension_numbers<[0], [0], [1], [1], [0, 1, 1, 1], [], []>} : vector<16x32xf32>, vector<16x256xf32>, vector<32x256xf32> -> vector<32x256xf32>
    %c0_8 = arith.constant 0 : index
    %c0_9 = arith.constant 0 : index
    %30 = vector.load %arg2[%c0_8, %c0_9] : memref<64x256xf32, #tpu.memory_space<vmem>>, vector<32x256xf32>
    tpu.vector_store %arg2[%c0_8, %c0_9], %28 {strides = array<i32>} : memref<64x256xf32, #tpu.memory_space<vmem>>, vector<32x256xf32>,
    %c32 = arith.constant 32 : index
    %c0_10 = arith.constant 0 : index
    %31 = vector.load %arg2[%c32, %c0_10] : memref<64x256xf32, #tpu.memory_space<vmem>>, vector<32x256xf32>
    tpu.vector_store %arg2[%c32, %c0_10], %29 {strides = array<i32>} : memref<64x256xf32, #tpu.memory_space<vmem>>, vector<32x256xf32>,
    return
  }
}

</mosaic_0001>

<bundles_post_ra>
// kernel: position_embedding_learned.1
= control target key start
LH: loop header
LB: loop body
LE: loop exit
PB: predicated region body
PF: predicated region fallthrough
CT: control target
= control target key end

     0   :  { %v15_v0 = vlaneseq  ;;  %v384_v3 = vmov 0.0   ;;  %v385_v22 = vmov 1.0   ;;  %s478_s1 = inlined_call_operand.vmem [shape: f32[50,32], index: 1, kind: input, shape index: {}]   ;;  %s479_s0 = inlined_call_operand.vmem [shape: f32[50,32], index: 0, kind: input, shape index: {}]   ;;  %s480_s2 = inlined_call_operand.vmem [shape: f32[64,256], index: 2, kind: output, shape index: {}]  }
   0x1   :  { %v13_v1 = vld [vmem:[%s478_s1] sm:$0xff]  ;;  %180 = vmatprep.mubr.f32.mxu0 %v384_v3  ;;  %313 = vmatprep.mubr.f32.mxu1 %v384_v3  ;;  %v14_v6 = vld [vmem:[%s478_s1 + $0x8] sm:$0xff] }
   0x2   :  { %v11_v2 = vld [vmem:[%s479_s0] sm:$0xff]  ;;  %205 = vxpose.xlu1.b32.start [1/2] (short) (narrow) %v13_v1, 32  ;;  %v16_v4 = vand.u32 127, %v15_v0  ;;  %v31_v5 = vshrl.u32 %v15_v0, 7  ;;  %v12_v7 = vld [vmem:[%s479_s0 + $0x8] sm:$0xff] }
   0x3   :  { %71 = vxpose.xlu0.b32.start [1/2] (short) (narrow) %v11_v2, 32 }
   0x4   :  { %v17_v8 = vadd.s32 128, %v16_v4  ;;  %v32_v9 = vadd.s32 8, %v31_v5  ;;  %v18_v10 = vcvt.s32.f32 %v16_v4  ;;  %v47_v11 = vmul.u32 16, %v31_v5 }
   0x5   :  { %v33_v27 = vcvt.s32.f32 %v31_v5 }
   0x6   :  { %206 = vxpose.xlu1.b32.end [2/2] (short) (narrow) %v14_v6, 32  ;;  %v19_v12 = vcvt.s32.f32 %v17_v8  ;;  %v48_v13 = vmul.u32 16, %v32_v9  ;;  %v20_v14 = vadd.f32 0.5, %v18_v10  ;;  %vm50_vm0 = vcmp.ge.s32.totalorder %v17_v8, %v47_v11 }
   0x7   :  { %72 = vxpose.xlu0.b32.end [2/2] (short) (narrow) %v12_v7, 32  ;;  %v53_v15 = vadd.s32 16, %v47_v11  ;;  %vm49_vm4 = vcmp.ge.s32.totalorder %v16_v4, %v47_v11  ;;  %v34_v24 = vcvt.s32.f32 %v32_v9 }
   0x8   :  { %v21_v16 = vadd.f32 0.5, %v19_v12  ;;  %vm52_vm1 = vcmp.ge.s32.totalorder %v17_v8, %v48_v13  ;;  %v54_v17 = vadd.s32 16, %v48_v13  ;;  %v22_v18 = vmul.f32 0.0625, %v20_v14 }
   0x9   :  { %vm51_vm2 = vcmp.ge.s32.totalorder %v16_v4, %v48_v13  ;;  %vm56_vm3 = vcmp.lt.s32.totalorder %v17_v8, %v53_v15  ;;  %vm55_vm5 = vcmp.lt.s32.totalorder %v16_v4, %v53_v15 }
   0xa   :  { %v23_v19 = vmul.f32 0.0625, %v21_v16  ;;  %vm58_vm6 = vcmp.lt.s32.totalorder %v17_v8, %v54_v17  ;;  %v24_v20 = vfloor.f32 %v22_v18  ;;  %vm57_vm7 = vcmp.lt.s32.totalorder %v16_v4, %v54_v17  ;;  %vm60_vm8 = vmand %vm50_vm0, %vm56_vm3 }
   0xb   :  { %vm62_vm9 = vmand %vm52_vm1, %vm58_vm6  ;;  %vm103_vm0 = vcmask 130048  }
   0xc   :  { %v25_v21 = vfloor.f32 %v23_v19  ;;  %374 = vmatprep.subr.msk.mxu1 %vm62_vm9, %v385_v22  ;;  %v26_v23 = vmul.f32 16.0, %v24_v20  ;;  %vm61_vm10 = vmand %vm51_vm2, %vm57_vm7 }
   0xd   :  { %375 = vmatpush1.msk.msra.mxu1 %vm61_vm10, %v385_v22  ;;  %vm59_vm11 = vmand %vm49_vm4, %vm55_vm5 }
   0xe   :  { %v27_v25 = vmul.f32 16.0, %v25_v21  ;;  %v28_v26 = vsub.f32 %v18_v10, %v26_v23  ;;  %376 = vmatprep.subr.msk.mxu1 %vm60_vm8, %v385_v22 }
   0xf   :  { %377 = vmatpush1.msk.msra.mxu1 %vm59_vm11, %v385_v22 }
  0x10   :  { %v29_v28 = vsub.f32 %v19_v12, %v27_v25  ;;  %vm37_vm12 = vcmp.eq.f32.partialorder %v28_v26, %v34_v24  ;;  %vm35_vm15 = vcmp.eq.f32.partialorder %v28_v26, %v33_v27 }
  0x12   :  { %vm38_vm13 = vcmp.eq.f32.partialorder %v29_v28, %v34_v24  ;;  %vm36_vm14 = vcmp.eq.f32.partialorder %v29_v28, %v33_v27 }
  0x13   :  { %366 = vmatprep.subr.msk.mxu0 %vm38_vm13, %v385_v22 }
  0x14   :  { %367 = vmatpush1.msk.msra.mxu0 %vm37_vm12, %v385_v22 }
  0x15   :  { %368 = vmatprep.subr.msk.mxu0 %vm36_vm14, %v385_v22 }
  0x16   :  { %369 = vmatpush1.msk.msra.mxu0 %vm35_vm15, %v385_v22 }
  0x7e   :  { %v221_v29 = vpop.trf.xlu1 }
  0x7f   :  { %v87_v30 = vpop.trf.xlu0  ;;  %378 = vmatmul.mubr.msk.f32.vlgmr.msra.gmra.mxu1 %vm103_vm0, %v221_v29 }
  0x80   :  { %370 = vmatmul.mubr.msk.f32.vlgmr.msra.gmra.mxu0 %vm103_vm0, %v87_v30  ;;  %319 = vmatprep.mubr.f32.mxu1 %v384_v3 }
  0x81   :  { %186 = vmatprep.mubr.f32.mxu0 %v384_v3 }
  0x82   :  { %v222_v31 = vpop.trf.xlu1 }
  0x83   :  { %v88_v32 = vpop.trf.xlu0  ;;  %379 = vmatmul.mubr.msk.f32.gmra.mxu1 %vm103_vm0, %v222_v31 }
  0x84   :  { %371 = vmatmul.mubr.msk.f32.gmra.mxu0 %vm103_vm0, %v88_v32  ;;  %325 = vmatprep.mubr.f32.mxu1 %v384_v3 }
  0x85   :  { %192 = vmatprep.mubr.f32.mxu0 %v384_v3 }
  0x86   :  { %v223_v33 = vpop.trf.xlu1 }
  0x87   :  { %v89_v34 = vpop.trf.xlu0  ;;  %380 = vmatmul.mubr.msk.f32.gmra.mxu1 %vm103_vm0, %v223_v33 }
  0x88   :  { %372 = vmatmul.mubr.msk.f32.gmra.mxu0 %vm103_vm0, %v89_v34  ;;  %331 = vmatprep.mubr.f32.mxu1 %v384_v3 }
  0x89   :  { %198 = vmatprep.mubr.f32.mxu0 %v384_v3 }
  0x8a   :  { %v224_v35 = vpop.trf.xlu1 }
  0x8b   :  { %v90_v36 = vpop.trf.xlu0  ;;  %381 = vmatmul.mubr.msk.f32.gmra.mxu1 %vm103_vm0, %v224_v35 }
  0x8c   :  { %373 = vmatmul.mubr.msk.f32.gmra.mxu0 %vm103_vm0, %v90_v36 }
 0x13f   :  { %v315_v38 = vpop.f32.mrf.mxu1 }
 0x140   :  { %v182_v37 = vpop.f32.mrf.mxu0  ;;  %346 = vst [vmem:[%s480_s2 + $0x40] sm:$0xff] %v315_v38 }
 0x141   :  { %338 = vst [vmem:[%s480_s2] sm:$0xff] %v182_v37  ;;  %v317_v40 = vpop.f32.mrf.mxu1 }
 0x142   :  { %v184_v39 = vpop.f32.mrf.mxu0  ;;  %347 = vst [vmem:[%s480_s2 + $0x48] sm:$0xff] %v317_v40 }
 0x143   :  { %339 = vst [vmem:[%s480_s2 + $0x8] sm:$0xff] %v184_v39  ;;  %v321_v42 = vpop.f32.mrf.mxu1 }
 0x144   :  { %v188_v41 = vpop.f32.mrf.mxu0  ;;  %348 = vst [vmem:[%s480_s2 + $0x50] sm:$0xff] %v321_v42 }
 0x145   :  { %340 = vst [vmem:[%s480_s2 + $0x10] sm:$0xff] %v188_v41  ;;  %v323_v44 = vpop.f32.mrf.mxu1 }
 0x146   :  { %v190_v43 = vpop.f32.mrf.mxu0  ;;  %349 = vst [vmem:[%s480_s2 + $0x58] sm:$0xff] %v323_v44 }
 0x147   :  { %341 = vst [vmem:[%s480_s2 + $0x18] sm:$0xff] %v190_v43  ;;  %v327_v46 = vpop.f32.mrf.mxu1 }
 0x148   :  { %v194_v45 = vpop.f32.mrf.mxu0  ;;  %350 = vst [vmem:[%s480_s2 + $0x60] sm:$0xff] %v327_v46 }
 0x149   :  { %342 = vst [vmem:[%s480_s2 + $0x20] sm:$0xff] %v194_v45  ;;  %v329_v48 = vpop.f32.mrf.mxu1 }
 0x14a   :  { %v196_v47 = vpop.f32.mrf.mxu0  ;;  %351 = vst [vmem:[%s480_s2 + $0x68] sm:$0xff] %v329_v48 }
 0x14b   :  { %343 = vst [vmem:[%s480_s2 + $0x28] sm:$0xff] %v196_v47  ;;  %v333_v50 = vpop.f32.mrf.mxu1 }
 0x14c   :  { %v200_v49 = vpop.f32.mrf.mxu0  ;;  %352 = vst [vmem:[%s480_s2 + $0x70] sm:$0xff] %v333_v50 }
 0x14d   :  { %344 = vst [vmem:[%s480_s2 + $0x30] sm:$0xff] %v200_v49  ;;  %v335_v52 = vpop.f32.mrf.mxu1 }
 0x14e   :  { %v202_v51 = vpop.f32.mrf.mxu0  ;;  %353 = vst [vmem:[%s480_s2 + $0x78] sm:$0xff] %v335_v52 }
 0x14f   :  { %345 = vst [vmem:[%s480_s2 + $0x38] sm:$0xff] %v202_v51 }

</bundles_post_ra>
